<compile_context>
chip_gen: v7x
topology: tpu7x:2x2x1
jax: 0.10.0
libtpu: 0.0.40
codegen_flags: <defaults>
</compile_context>

<pallas_src>
import functools
import math

import jax
import jax.numpy as jnp
from jax.experimental import pallas as pl
from jax.experimental.pallas import tpu as pltpu

LEAKY_SLOPE = 0.01  # PyTorch nn.LeakyReLU default negative_slope
_LANE = 128


def _leaky_relu(x):
    return jnp.where(x > 0, x, LEAKY_SLOPE * x)


def _round_up(x, m):
    return ((x + m - 1) // m) * m


def _layout(dim, num_classes):
    """Row offsets of each packed segment inside the parameter slab.

    Fused (4-branch block-diag) widths: layer1 -> 2*dim, layer2 -> dim,
    layer3 -> dim//2, layer4 -> num_classes. Every segment starts on an
    8-row (sublane) boundary; slab is 128-lane wide.
    """
    H1, H2, H3 = 2 * dim, dim, dim // 2
    offs = {}
    r = 0
    for name, rows in (("w1", 4 * dim), ("w2", H1), ("w3", H2), ("w4", H3),
                       ("b1", 1), ("b2", 1), ("b3", 1), ("b4", 1)):
        offs[name] = r
        r += _round_up(rows, 8)
    width = _round_up(max(H1, H2, H3, num_classes, _LANE), _LANE)
    return offs, r, width


def _spatial_linear_kernel(x_ref, p_ref, o_ref, *, dim, num_classes, offs):
    """x_ref: [B, 4*dim] concat input; p_ref: packed param slab; o_ref: [B, C]."""
    D4, H1, H2, H3 = 4 * dim, 2 * dim, dim, dim // 2
    x = x_ref[...]

    # layer 1 (block-diag over the 4 branches)
    w1 = p_ref[offs["w1"]:offs["w1"] + D4, 0:H1]
    b1 = p_ref[offs["b1"]:offs["b1"] + 1, 0:H1]
    h = _leaky_relu(jnp.dot(x, w1, preferred_element_type=jnp.float32) + b1)

    # layer 2
    w2 = p_ref[offs["w2"]:offs["w2"] + H1, 0:H2]
    b2 = p_ref[offs["b2"]:offs["b2"] + 1, 0:H2]
    h = _leaky_relu(jnp.dot(h, w2, preferred_element_type=jnp.float32) + b2)

    # layer 3
    w3 = p_ref[offs["w3"]:offs["w3"] + H2, 0:H3]
    b3 = p_ref[offs["b3"]:offs["b3"] + 1, 0:H3]
    h = _leaky_relu(jnp.dot(h, w3, preferred_element_type=jnp.float32) + b3)

    # layer 4: the 4 branch weights are stacked along K, so this contraction
    # already produces mlp1(x1)+mlp2(x2)+mlp3(x3)+mlp4(x4); b4 is pre-summed.
    w4 = p_ref[offs["w4"]:offs["w4"] + H3, 0:num_classes]
    b4 = p_ref[offs["b4"]:offs["b4"] + 1, 0:num_classes]
    logits = jnp.dot(h, w4, preferred_element_type=jnp.float32) + b4

    # numerically stable softmax; reciprocal on the EUP (approx) slot
    m = jnp.max(logits, axis=-1, keepdims=True)
    e = jnp.exp(logits - m)
    denom = jnp.sum(e, axis=-1, keepdims=True)
    o_ref[...] = (e * pl.reciprocal(denom, approx=True)).astype(o_ref.dtype)


def make_params(key, dim, num_classes):
    """Per-branch params, PyTorch-style uniform(-1/sqrt(in), 1/sqrt(in)).
    Stored as (in, out) i.e. transposed vs nn.Linear's (out, in)."""
    dims = [dim, dim // 2, dim // 4, dim // 8, num_classes]
    params = {}
    for layer in range(4):
        d_in, d_out = dims[layer], dims[layer + 1]
        bound = 1.0 / math.sqrt(d_in)
        key, kw, kb = jax.random.split(key, 3)
        params[f"w{layer + 1}"] = jax.random.uniform(
            kw, (4, d_in, d_out), jnp.float32, minval=-bound, maxval=bound)
        params[f"b{layer + 1}"] = jax.random.uniform(
            kb, (4, 1, d_out), jnp.float32, minval=-bound, maxval=bound)
    return params


def _block_diag(w):
    """[4, d_in, d_out] per-branch weights -> [4*d_in, 4*d_out] block-diagonal."""
    n, di, do = w.shape
    out = jnp.zeros((n * di, n * do), w.dtype)
    for i in range(n):
        out = out.at[i * di:(i + 1) * di, i * do:(i + 1) * do].set(w[i])
    return out


def pack_params(params, dim, num_classes):
    """Repack the 4-branch params into one tile-aligned f32 slab (done once)."""
    offs, rows, width = _layout(dim, num_classes)
    slab = jnp.zeros((rows, width), jnp.float32)

    pieces = {
        "w1": _block_diag(params["w1"]),                 # [4D, 2D]
        "w2": _block_diag(params["w2"]),                 # [2D, D]
        "w3": _block_diag(params["w3"]),                 # [D,  D/2]
        "w4": params["w4"].reshape(-1, num_classes),     # [D/2, C]  (stacked along K)
        "b1": params["b1"].reshape(1, -1),               # [1, 2D]
        "b2": params["b2"].reshape(1, -1),               # [1, D]
        "b3": params["b3"].reshape(1, -1),               # [1, D/2]
        "b4": params["b4"].sum(axis=0),                  # [1, C]   (branch sum)
    }
    for name, val in pieces.items():
        r0 = offs[name]
        slab = slab.at[r0:r0 + val.shape[0], 0:val.shape[1]].set(val)
    return slab


def spatial_linear(x1, x2, x3, x4, packed, dim, num_classes):
    x_cat = jnp.concatenate([x1, x2, x3, x4], axis=-1)  # [B, 4*dim] lane-dense
    B = x_cat.shape[0]
    offs, _, _ = _layout(dim, num_classes)
    kernel = functools.partial(_spatial_linear_kernel,
                               dim=dim, num_classes=num_classes, offs=offs)
    vmem = pl.BlockSpec(memory_space=pltpu.MemorySpace.VMEM)
    return pl.pallas_call(
        kernel,
        out_shape=jax.ShapeDtypeStruct((B, num_classes), jnp.float32),
        in_specs=[vmem, vmem],
        out_specs=vmem,
    )(x_cat, packed)


def spatial_linear_ref(x1, x2, x3, x4, params):
    """Pure-JAX reference on the ORIGINAL per-branch params (also validates the
    block-diagonal repack against the PyTorch-equivalent forward)."""
    xs = [x1, x2, x3, x4]
    out = 0.0
    for i in range(4):
        h = xs[i]
        for layer in range(1, 5):
            h = h @ params[f"w{layer}"][i] + params[f"b{layer}"][i]
            if layer < 4:
                h = jnp.where(h > 0, h, LEAKY_SLOPE * h)
        out = out + h
    return jax.nn.softmax(out, axis=-1)


if __name__ == "__main__":
    B, DIM, NUM_CLASSES = 8, 32, 8

    key = jax.random.PRNGKey(0)
    kp, k1, k2, k3, k4 = jax.random.split(key, 5)
    params = make_params(kp, DIM, NUM_CLASSES)
    packed = pack_params(params, DIM, NUM_CLASSES)

    x1 = jax.random.normal(k1, (B, DIM), jnp.float32)
    x2 = jax.random.normal(k2, (B, DIM), jnp.float32)
    x3 = jax.random.normal(k3, (B, DIM), jnp.float32)
    x4 = jax.random.normal(k4, (B, DIM), jnp.float32)

    out = spatial_linear(x1, x2, x3, x4, packed, DIM, NUM_CLASSES)
    out = jax.block_until_ready(out)

    ref = spatial_linear_ref(x1, x2, x3, x4, params)
    assert out.shape == (B, NUM_CLASSES)
    # tolerance relaxed (1e-3) because the softmax denominator uses the
    # EUP approximate reciprocal (pl.reciprocal(approx=True)).
    assert jnp.allclose(out, ref, atol=1e-3, rtol=1e-3), "mismatch vs reference"

    print("KERNEL_OK")
</pallas_src>

<mosaic_0001>
module attributes {stable_mosaic.version = 11 : i64} {
  func.func @_spatial_linear_kernel(%arg0: memref<8x128xf32, #tpu.memory_space<vmem>>, %arg1: memref<272x128xf32, #tpu.memory_space<vmem>>, %arg2: memref<8x8xf32, #tpu.memory_space<vmem>>) attributes {dimension_semantics = [], scalar_prefetch = 0 : i64, scratch_operands = 0 : i64, tpu.core_type = #tpu.core_type<tc>} {
    %c0 = arith.constant 0 : index
    %c0_0 = arith.constant 0 : index
    %0 = vector.load %arg0[%c0, %c0_0] : memref<8x128xf32, #tpu.memory_space<vmem>>, vector<8x128xf32>
    %c0_1 = arith.constant 0 : index
    %c0_2 = arith.constant 0 : index
    %1 = vector.load %arg1[%c0_1, %c0_2] : memref<272x128xf32, #tpu.memory_space<vmem>>, vector<128x64xf32>
    %c240 = arith.constant 240 : index
    %c0_3 = arith.constant 0 : index
    %2 = vector.load %arg1[%c240, %c0_3] : memref<272x128xf32, #tpu.memory_space<vmem>>, vector<1x64xf32>
    %cst = arith.constant dense<0.000000e+00> : vector<8x64xf32>
    %3 = tpu.matmul %0, %1, %cst {dimension_numbers = #tpu.dot_dimension_numbers<[1], [0], [0], [1], [0, 0, 1, 1], [], []>} : vector<8x128xf32>, vector<128x64xf32>, vector<8x64xf32> -> vector<8x64xf32>
    %4 = vector.broadcast %2 : vector<1x64xf32> to vector<8x64xf32>
    %5 = arith.addf %3, %4 : vector<8x64xf32>
    %cst_4 = arith.constant 0.000000e+00 : f32
    %6 = vector.broadcast %cst_4 : f32 to vector<8x64xf32>
    %7 = arith.cmpf ogt, %5, %6 : vector<8x64xf32>
    %cst_5 = arith.constant 0.00999999977 : f32
    %8 = vector.broadcast %cst_5 : f32 to vector<8x64xf32>
    %9 = arith.mulf %8, %5 : vector<8x64xf32>
    %10 = arith.select %7, %5, %9 : vector<8x64xi1>, vector<8x64xf32>
    %c128 = arith.constant 128 : index
    %c0_6 = arith.constant 0 : index
    %11 = vector.load %arg1[%c128, %c0_6] : memref<272x128xf32, #tpu.memory_space<vmem>>, vector<64x32xf32>
    %c248 = arith.constant 248 : index
    %c0_7 = arith.constant 0 : index
    %12 = vector.load %arg1[%c248, %c0_7] : memref<272x128xf32, #tpu.memory_space<vmem>>, vector<1x32xf32>
    %cst_8 = arith.constant dense<0.000000e+00> : vector<8x32xf32>
    %13 = tpu.matmul %10, %11, %cst_8 {dimension_numbers = #tpu.dot_dimension_numbers<[1], [0], [0], [1], [0, 0, 1, 1], [], []>} : vector<8x64xf32>, vector<64x32xf32>, vector<8x32xf32> -> vector<8x32xf32>
    %14 = vector.broadcast %12 : vector<1x32xf32> to vector<8x32xf32>
    %15 = arith.addf %13, %14 : vector<8x32xf32>
    %cst_9 = arith.constant 0.000000e+00 : f32
    %16 = vector.broadcast %cst_9 : f32 to vector<8x32xf32>
    %17 = arith.cmpf ogt, %15, %16 : vector<8x32xf32>
    %cst_10 = arith.constant 0.00999999977 : f32
    %18 = vector.broadcast %cst_10 : f32 to vector<8x32xf32>
    %19 = arith.mulf %18, %15 : vector<8x32xf32>
    %20 = arith.select %17, %15, %19 : vector<8x32xi1>, vector<8x32xf32>
    %c192 = arith.constant 192 : index
    %c0_11 = arith.constant 0 : index
    %21 = vector.load %arg1[%c192, %c0_11] : memref<272x128xf32, #tpu.memory_space<vmem>>, vector<32x16xf32>
    %c256 = arith.constant 256 : index
    %c0_12 = arith.constant 0 : index
    %22 = vector.load %arg1[%c256, %c0_12] : memref<272x128xf32, #tpu.memory_space<vmem>>, vector<1x16xf32>
    %cst_13 = arith.constant dense<0.000000e+00> : vector<8x16xf32>
    %23 = tpu.matmul %20, %21, %cst_13 {dimension_numbers = #tpu.dot_dimension_numbers<[1], [0], [0], [1], [0, 0, 1, 1], [], []>} : vector<8x32xf32>, vector<32x16xf32>, vector<8x16xf32> -> vector<8x16xf32>
    %24 = vector.broadcast %22 : vector<1x16xf32> to vector<8x16xf32>
    %25 = arith.addf %23, %24 : vector<8x16xf32>
    %cst_14 = arith.constant 0.000000e+00 : f32
    %26 = vector.broadcast %cst_14 : f32 to vector<8x16xf32>
    %27 = arith.cmpf ogt, %25, %26 : vector<8x16xf32>
    %cst_15 = arith.constant 0.00999999977 : f32
    %28 = vector.broadcast %cst_15 : f32 to vector<8x16xf32>
    %29 = arith.mulf %28, %25 : vector<8x16xf32>
    %30 = arith.select %27, %25, %29 : vector<8x16xi1>, vector<8x16xf32>
    %c224 = arith.constant 224 : index
    %c0_16 = arith.constant 0 : index
    %31 = vector.load %arg1[%c224, %c0_16] : memref<272x128xf32, #tpu.memory_space<vmem>>, vector<16x8xf32>
    %c264 = arith.constant 264 : index
    %c0_17 = arith.constant 0 : index
    %32 = vector.load %arg1[%c264, %c0_17] : memref<272x128xf32, #tpu.memory_space<vmem>>, vector<1x8xf32>
    %cst_18 = arith.constant dense<0.000000e+00> : vector<8x8xf32>
    %33 = tpu.matmul %30, %31, %cst_18 {dimension_numbers = #tpu.dot_dimension_numbers<[1], [0], [0], [1], [0, 0, 1, 1], [], []>} : vector<8x16xf32>, vector<16x8xf32>, vector<8x8xf32> -> vector<8x8xf32>
    %34 = vector.broadcast %32 : vector<1x8xf32> to vector<8x8xf32>
    %35 = arith.addf %33, %34 : vector<8x8xf32>
    %cst_19 = arith.constant dense<0xFF800000> : vector<8xf32>
    %36 = vector.multi_reduction <maximumf>, %35, %cst_19 [1] : vector<8x8xf32> to vector<8xf32>
    %37 = vector.shape_cast %36 : vector<8xf32> to vector<8x1xf32>
    %38 = vector.broadcast %37 : vector<8x1xf32> to vector<8x8xf32>
    %39 = arith.subf %35, %38 : vector<8x8xf32>
    %40 = math.exp %39 : vector<8x8xf32>
    %cst_20 = arith.constant dense<0.000000e+00> : vector<8xf32>
    %41 = vector.multi_reduction <add>, %40, %cst_20 [1] : vector<8x8xf32> to vector<8xf32>
    %42 = vector.shape_cast %41 : vector<8xf32> to vector<8x1xf32>
    %43 = tpu.reciprocal %42 {approx = true} : vector<8x1xf32> -> vector<8x1xf32>
    %44 = vector.broadcast %43 : vector<8x1xf32> to vector<8x8xf32>
    %45 = arith.mulf %40, %44 : vector<8x8xf32>
    %c0_21 = arith.constant 0 : index
    %c0_22 = arith.constant 0 : index
    %46 = vector.load %arg2[%c0_21, %c0_22] : memref<8x8xf32, #tpu.memory_space<vmem>>, vector<8x8xf32>
    tpu.vector_store %arg2[%c0_21, %c0_22], %45 {strides = array<i32>} : memref<8x8xf32, #tpu.memory_space<vmem>>, vector<8x8xf32>,
    return
  }
}

</mosaic_0001>

<bundles_post_ra>
// kernel: tpu_custom_call.1
= control target key start
LH: loop header
LB: loop body
LE: loop exit
PB: predicated region body
PF: predicated region fallthrough
CT: control target
= control target key end

     0   :  { %7 = vsyncpa [#allocation3], 0  ;;  %s753_s0 = inlined_call_operand.hbm [shape: f32[8,128], index: 0, kind: input, shape index: {}]   ;;  %s754_s1 = inlined_call_operand.hbm [shape: f32[272,128], index: 1, kind: input, shape index: {}]   ;;  %s755_s2 = inlined_call_operand.hbm [shape: f32[8,8], index: 2, kind: output, shape index: {}]  }
   0x1   :  { %8 = vsyncpa [#allocation6], 0 }
   0x2   :  { %9 = vsyncpa [#allocation4], 0  ;;  %s661_s9 = smov [#allocation2]   ;;  %s662_s11 = smov [#allocation5]  }
   0x3   :  { %s16_s10 = sshll.u32 %s661_s9, 4  ;;  %s25_s12 = sshll.u32 %s662_s11, 4  ;;  %s17_s10 = int_to_ptr.vmem [resolvable:$true] %s16_s10  ;;  %s684_s12 = int_to_ptr.vmem [resolvable:$true] %s25_s12 }
   0x4   :  { %s589_s15 = scalar_lea.hbm %s753_s0, 128 }
   0x5   :  { %p590_p0 = scmp.ne.s32.totalorder %s753_s0, %s589_s15  ;;  %p593_p1 = scmp.lt.u32.totalorder %s589_s15, %s753_s0 }
   0x7   :  { %p595_p2 = pnand %p593_p1, %p590_p0 }
   0x9   :  { %598 = shalt.err (!%p595_p2)
}
   0xa   :  { %s599_s20 = scalar_lea.vmem %s17_s10, 128  ;;  %p604_p4 = scmp.lt.s32.totalorder %s17_s10, %s17_s10 }
   0xb   :  { %p600_p3 = scmp.ne.s32.totalorder %s17_s10, %s599_s20  ;;  %p605_p5 = scmp.lt.s32.totalorder %s599_s20, %s599_s20 }
   0xd   :  { %p606_p6 = por %p605_p5, %p604_p4 }
   0xf   :  { %p607_p7 = pnand %p606_p6, %p600_p3 }
  0x11   :  { %610 = shalt.err (!%p607_p7)
}
  0x12   :  { %19 = dma.hbm_to_vmem [thread:$0]  %s753_s0, 128, %s17_s10, [#allocation3]  }
  0x13   :  { %s611_s25 = scalar_lea.hbm %s754_s1, 4352 }
  0x14   :  { %p612_p8 = scmp.ne.s32.totalorder %s754_s1, %s611_s25  ;;  %p615_p9 = scmp.lt.u32.totalorder %s611_s25, %s754_s1 }
  0x16   :  { %p617_p10 = pnand %p615_p9, %p612_p8 }
  0x18   :  { %620 = shalt.err (!%p617_p10)
}
  0x19   :  { %s621_s30 = scalar_lea.vmem %s684_s12, 4352  ;;  %p626_p12 = scmp.lt.s32.totalorder %s684_s12, %s684_s12 }
  0x1a   :  { %p622_p11 = scmp.ne.s32.totalorder %s684_s12, %s621_s30  ;;  %p627_p13 = scmp.lt.s32.totalorder %s621_s30, %s621_s30 }
  0x1c   :  { %p628_p0 = por %p627_p13, %p626_p12 }
  0x1e   :  { %p629_p1 = pnand %p628_p0, %p622_p11 }
  0x20   :  { %632 = shalt.err (!%p629_p1)
}
  0x21   :  { %s663_s0 = smov 128   ;;  %s664_s3 = smov 8  }
  0x22   :  { %31 = dma.hbm_to_vmem [thread:$0]  %s754_s1, 4352, %s684_s12, [#allocation6], %s663_s0, %s663_s0, %s664_s3  }
  0x23   :  { %655 = dma.done.wait [#allocation3], 128  }
  0x24   :  { %656 = vsyncadd [#allocation3], 4294967168 }
  0x25   :  { %657 = dma.done.wait [#allocation6], 4352  }
  0x26   :  { %658 = vsyncadd [#allocation6], 4294962944  ;;  %v665_v0 = vmov 0.0|0.0   ;;  %vm666_vm0 = vmmov 0   ;;  %v667_v1 = vmov 0.0   ;;  %v39_v2 = vld [vmem:[#allocation5] sm:$0xff] }
  0x27   :  { %532 = vmatprep.subr.bf16.mxu0 %v665_v0  ;;  %492 = vmatprep.mubr.msk.f32.mxu0 %vm666_vm0, %v667_v1  ;;  %v40_v3 = vld [vmem:[#allocation5 + $0x8] sm:$0xff]  ;;  %v41_v4 = vld [vmem:[#allocation5 + $0x10] sm:$0xff]  ;;  %v42_v6 = vld [vmem:[#allocation5 + $0x18] sm:$0xff]  ;;  %vm146_vm2 = vcmask 523264   ;;  %vm232_vm4 = vcmask 261120   ;;  %vm316_vm6 = vcmask 130048  }
  0x28   :  { %556 = vmatprep.subr.bf16.mxu1 %v665_v0  ;;  %511 = vmatprep.mubr.msk.f32.mxu1 %vm666_vm0, %v667_v1  ;;  %v533_v5 = vpack.c.bf16 %v40_v3, %v39_v2  ;;  %v536_v7 = vpack.c.bf16 %v42_v6, %v41_v4  ;;  %v43_v8 = vld [vmem:[#allocation5 + $0x20] sm:$0xff]  ;;  %v44_v9 = vld [vmem:[#allocation5 + $0x28] sm:$0xff]  ;;  %v135_v12 = vld [vmem:[#allocation5 + $0x90] sm:$0xff]  ;;  %vm390_vm7 = vcmask 64512   ;;  %s668_s1 = smov [#allocation7]  }
  0x29   :  { %v133_v10 = vld [vmem:[#allocation5 + $0x80] sm:$0xff]  ;;  %v134_v11 = vld [vmem:[#allocation5 + $0x88] sm:$0xff]  ;;  %v136_v13 = vld [vmem:[#allocation5 + $0x98] sm:$0xff]  ;;  %v539_v14 = vpack.c.bf16 %v44_v9, %v43_v8  ;;  %s409_s6 = sshll.u32 %s668_s1, 4  ;;  %s410_s6 = int_to_ptr.vmem [resolvable:$true] %s409_s6 }
  0x2a   :  { %534 = vmatpush3.bf16.msra.mxu0 %v533_v5  ;;  %v557_v15 = vpack.c.bf16 %v134_v11, %v133_v10  ;;  %v45_v16 = vld [vmem:[#allocation5 + $0x30] sm:$0xff]  ;;  %v46_v17 = vld [vmem:[#allocation5 + $0x38] sm:$0xff]  ;;  %v560_v18 = vpack.c.bf16 %v136_v13, %v135_v12  ;;  %v137_v19 = vld [vmem:[#allocation5 + $0xa0] sm:$0xff]  ;;  %s633_s7 = scalar_lea.vmem %s410_s6, 128  ;;  %p638_p3 = scmp.lt.s32.totalorder %s410_s6, %s410_s6 }
  0x2b   :  { %535 = vmatprep.subr.bf16.mxu0 %v665_v0  ;;  %v138_v20 = vld [vmem:[#allocation5 + $0xa8] sm:$0xff]  ;;  %v542_v21 = vpack.c.bf16 %v46_v17, %v45_v16  ;;  %v47_v22 = vld [vmem:[#allocation5 + $0x40] sm:$0xff]  ;;  %v49_v26 = vld [vmem:[#allocation5 + $0x50] sm:$0xff]  ;;  %p634_p2 = scmp.ne.s32.totalorder %s410_s6, %s633_s7  ;;  %p639_p4 = scmp.lt.s32.totalorder %s633_s7, %s633_s7 }
  0x2c   :  { %558 = vmatpush3.bf16.msra.mxu1 %v557_v15  ;;  %v48_v23 = vld [vmem:[#allocation5 + $0x48] sm:$0xff]  ;;  %v563_v24 = vpack.c.bf16 %v138_v20, %v137_v19  ;;  %v50_v27 = vld [vmem:[#allocation5 + $0x58] sm:$0xff]  ;;  %v51_v29 = vld [vmem:[#allocation5 + $0x60] sm:$0xff] }
  0x2d   :  { %559 = vmatprep.subr.bf16.mxu1 %v665_v0  ;;  %v545_v25 = vpack.c.bf16 %v48_v23, %v47_v22  ;;  %v548_v28 = vpack.c.bf16 %v50_v27, %v49_v26  ;;  %v52_v30 = vld [vmem:[#allocation5 + $0x68] sm:$0xff]  ;;  %v53_v32 = vld [vmem:[#allocation5 + $0x70] sm:$0xff]  ;;  %v54_v33 = vld [vmem:[#allocation5 + $0x78] sm:$0xff]  ;;  %p640_p5 = por %p639_p4, %p638_p3 }
  0x2e   :  { %537 = vmatpush3.bf16.msra.mxu0 %v536_v7  ;;  %v551_v31 = vpack.c.bf16 %v52_v30, %v51_v29  ;;  %v554_v34 = vpack.c.bf16 %v54_v33, %v53_v32  ;;  %v38_v35 = vld [vmem:[#allocation2] sm:$0xff]  ;;  %v139_v36 = vld [vmem:[#allocation5 + $0xb0] sm:$0xff]  ;;  %v223_v41 = vld [vmem:[#allocation5 + $0xc0] sm:$0xff] }
  0x2f   :  { %538 = vmatprep.subr.bf16.mxu0 %v665_v0  ;;  %v140_v37 = vld [vmem:[#allocation5 + $0xb8] sm:$0xff]  ;;  %v419_v39 = vld [vmem:[#allocation5 + $0xf0] ss:$0 sm:$0xff]  ;;  %v224_v42 = vld [vmem:[#allocation5 + $0xc8] sm:$0xff]  ;;  %p641_p6 = pnand %p640_p5, %p634_p2 }
  0x30   :  { %561 = vmatpush3.bf16.msra.mxu1 %v560_v18  ;;  %v566_v38 = vpack.c.bf16 %v140_v37, %v139_v36  ;;  %v569_v46 = vpack.c.bf16 %v224_v42, %v223_v41  ;;  %v225_v48 = vld [vmem:[#allocation5 + $0xd0] sm:$0xff]  ;;  %v226_v49 = vld [vmem:[#allocation5 + $0xd8] sm:$0xff]  ;;  %v309_v57 = vld [vmem:[#allocation5 + $0xe0] sm:$0xff] }
  0x31   :  { %562 = vmatprep.subr.bf16.mxu1 %v665_v0  ;;  %v572_v50 = vpack.c.bf16 %v226_v49, %v225_v48  ;;  %v420_v51 = vld [vmem:[#allocation5 + $0xf8] ss:$0 sm:$0xff]  ;;  %v310_v58 = vld [vmem:[#allocation5 + $0xe8] sm:$0xff]  ;;  %v422_v60 = vld [vmem:[#allocation5 + $0x100] ss:$0 sm:$0xff] }
  0x32   :  { %540 = vmatpush3.bf16.msra.mxu0 %v539_v14  ;;  %v575_v59 = vpack.c.bf16 %v310_v58, %v309_v57  ;;  %v424_v3 = vld [vmem:[#allocation5 + $0x108] ss:$0 sm:$0xff] }
  0x33   :  { %541 = vmatprep.subr.bf16.mxu0 %v665_v0 }
  0x34   :  { %564 = vmatpush3.bf16.msra.mxu1 %v563_v24 }
  0x35   :  { %565 = vmatprep.subr.bf16.mxu1 %v665_v0 }
  0x36   :  { %543 = vmatpush3.bf16.msra.mxu0 %v542_v21 }
  0x37   :  { %544 = vmatprep.subr.bf16.mxu0 %v665_v0 }
  0x38   :  { %567 = vmatpush3.bf16.msra.mxu1 %v566_v38 }
  0x39   :  { %568 = vmatprep.subr.bf16.mxu1 %v665_v0 }
  0x3a   :  { %546 = vmatpush3.bf16.msra.mxu0 %v545_v25 }
  0x3b   :  { %547 = vmatprep.subr.bf16.mxu0 %v665_v0 }
  0x3e   :  { %549 = vmatpush3.bf16.msra.mxu0 %v548_v28 }
  0x3f   :  { %550 = vmatprep.subr.bf16.mxu0 %v665_v0 }
  0x42   :  { %552 = vmatpush3.bf16.msra.mxu0 %v551_v31 }
  0x43   :  { %553 = vmatprep.subr.bf16.mxu0 %v665_v0 }
  0x46   :  { %555 = vmatpush3.bf16.msra.mxu0 %v554_v34 }
  0x49   :  { %493 = vmatmul.mubr.f32.vlgmr.msra.gmra.mrb[0].mxu0 %v38_v35 }
 0x11c   :  { %v126_v40 = vpop.f32.mrb[0].mxu0 }
 0x11d   :  { %v127_v43 = vadd.f32 %v419_v39, %v126_v40  ;;  %v494_v44 = vpop.f32.mrb[1].mxu0 }
 0x11f   :  { %vm130_vm1 = vcmp.gt.f32.partialorder %v127_v43, 0.0  ;;  %v131_v45 = vmul.f32 0.01, %v127_v43 }
 0x121   :  { %v132_v47 = vsel %vm130_vm1, %v127_v43, %v131_v45 }
 0x122   :  { %512 = vmatmul.mubr.msk.f32.vlgmr.msra.gmra.mrb[0].mxu1 %vm146_vm2, %v132_v47 }
 0x123   :  { %570 = vmatpush3.bf16.msra.mxu1 %v569_v46  ;;  %522 = vmatprep.mubr.msk.f32.mxu1 %vm666_vm0, %v667_v1 }
 0x124   :  { %571 = vmatprep.subr.bf16.mxu1 %v665_v0 }
 0x127   :  { %573 = vmatpush3.bf16.msra.mxu1 %v572_v50 }
 0x128   :  { %574 = vmatprep.subr.bf16.mxu1 %v665_v0 }
 0x1f5   :  { %v216_v52 = vpop.f32.mrb[0].mxu1 }
 0x1f6   :  { %v217_v53 = vadd.f32 %v420_v51, %v216_v52  ;;  %v513_v54 = vpop.f32.mrb[1].mxu1 }
 0x1f8   :  { %vm220_vm3 = vcmp.gt.f32.partialorder %v217_v53, 0.0  ;;  %v221_v55 = vmul.f32 0.01, %v217_v53 }
 0x1fa   :  { %v222_v56 = vsel %vm220_vm3, %v217_v53, %v221_v55 }
 0x1fb   :  { %523 = vmatmul.mubr.msk.f32.vlgmr.msra.gmra.mrb[2].mxu1 %vm232_vm4, %v222_v56 }
 0x1fc   :  { %529 = vmatprep.mubr.msk.f32.mxu1 %vm666_vm0, %v667_v1  ;;  %576 = vmatpush3.bf16.msra.mxu1 %v575_v59 }
 0x2ce   :  { %v302_v61 = vpop.f32.mrb[2].mxu1 }
 0x2cf   :  { %v303_v62 = vadd.f32 %v422_v60, %v302_v61  ;;  %v524_v63 = vpop.f32.mrb[3].mxu1 }
 0x2d1   :  { %vm306_vm5 = vcmp.gt.f32.partialorder %v303_v62, 0.0  ;;  %v307_v0 = vmul.f32 0.01, %v303_v62 }
 0x2d3   :  { %v308_v2 = vsel %vm306_vm5, %v303_v62, %v307_v0 }
 0x2d4   :  { %530 = vmatmul.mubr.msk.f32.vlgmr.msra.gmra.mrb[4].mxu1 %vm316_vm6, %v308_v2 }
 0x3a7   :  { %v386_v4 = vpop.f32.mrb[4].mxu1 }
 0x3a8   :  { %v387_v5 = vadd.f32 %v424_v3, %v386_v4  ;;  %v531_v6 = vpop.f32.mrb[5].mxu1 }
 0x3aa   :  { %v391_v1 = vsel %vm390_vm7, %v387_v5, -inf }
 0x3ab   :  { %392 = vmax.xlane.f32.xlu0 %v391_v1 }
 0x438   :  { %v393_v7 = vpop.xlane.xlu0 %392 }
 0x439   :  { %v394_v8 = vsub.f32 %v387_v5, %v393_v7 }
 0x43b   :  { %v395_v9 = vmul.f32 1.442695, %v394_v8 }
 0x43d   :  { %585 = vpow2.f32 %v395_v9 }
 0x447   :  { %v586_v10 = vpop.eup %585 }
 0x448   :  { %v397_v11 = vsel %vm390_vm7, %v586_v10, 0.0 }
 0x449   :  { %398 = vadd.xlane.f32.xlu0 %v397_v11 }
 0x4d6   :  { %v399_v12 = vpop.xlane.xlu0 %398 }
 0x4d7   :  { %587 = vrcp.f32 %v399_v12 }
 0x4e1   :  { %v588_v13 = vpop.eup %587 }
 0x4e2   :  { %v401_v14 = vmul.f32 %v588_v13, %v586_v10 }
 0x4e4   :  { %402 = vst.msk [vmem:[#allocation7] sm:$0xff] %vm390_vm7, %v401_v14 }
 0x4e5   :  { %644 = shalt.err (!%p641_p6)
}
 0x4e6   :  { %s645_s10 = scalar_lea.hbm %s755_s2, 128 }
 0x4e7   :  { %p646_p7 = scmp.ne.s32.totalorder %s755_s2, %s645_s10  ;;  %p649_p8 = scmp.lt.u32.totalorder %s645_s10, %s755_s2 }
 0x4e9   :  { %p651_p9 = pnand %p649_p8, %p646_p7 }
 0x4eb   :  { %654 = shalt.err (!%p651_p9)
}
 0x4ec   :  { %412 = dma.vmem_to_hbm [thread:$0]  %s410_s6, 128, %s755_s2, [#allocation4]  }
 0x4ed   :  { %659 = dma.done.wait [#allocation4], 128  }
 0x4ee   :  { %660 = vsyncadd [#allocation4], 4294967168 }
 0x4ef   :  { %416 = vsyncpa [#allocation3], 1 }
 0x4f0   :  { %417 = vsyncpa [#allocation6], 1 }
 0x4f1   :  { %418 = vsyncpa [#allocation4], 1 }

</bundles_post_ra>
